<compile_context>
chip_gen: v6e
topology: v6e:2x2x1
jax: 0.10.0
libtpu: 0.0.40
codegen_flags: <defaults>
</compile_context>

<pallas_src>
import jax
import jax.numpy as jnp
from jax.experimental import pallas as pl
from jax.experimental.pallas import tpu as pltpu


def _round_up(x, m):
    return (x + m - 1) // m * m


def _pick_batch_group(B, s_pad, target_rows=1024):
    """Largest divisor of B such that one grid step covers ~target_rows rows."""
    bg = 1
    for d in range(1, B + 1):
        if B % d == 0 and d * s_pad <= max(target_rows, s_pad):
            bg = d
    return bg


def embeddings_kernel(patches_ref, w_ref, add_ref, out_ref):
    """One grid step == BG whole batches of the (S_pad, Dp) output.

    patches_ref: (BG, S_pad, Kp) bf16 -- flattened patches; row 0 of each batch
                                         is a zero "cls patch", tail rows are
                                         zero sequence padding.
    w_ref:       (Kp, Dp)        bf16 -- conv weight as projection matrix
                                         (grid-invariant, stays in VMEM).
    add_ref:     (S_pad, Dp)     f32  -- cls_token/pos-emb/conv-bias table
                                         (grid-invariant, loaded once).
    out_ref:     (BG, S_pad, Dp)      -- output tile (f32 or bf16).
    """
    bg, s, kp = patches_ref.shape
    dp = w_ref.shape[1]
    # Flatten the batch group into the MXU row dim (S_pad is a multiple of 8,
    # so this merge is layout-free), run one big matmul, f32 accumulate.
    p2d = patches_ref[...].reshape(bg * s, kp)
    acc = jnp.dot(p2d, w_ref[...], preferred_element_type=jnp.float32)
    # Broadcast-add the per-sequence table over the batch group; lane-dense store.
    out_ref[...] = (acc.reshape(bg, s, dp) + add_ref[...]).astype(out_ref.dtype)
    # TODO(synk): Dropout is identity in eval mode; training-mode dropout
    # (pltpu.prng_seed / prng_random_bits masking) is intentionally not applied.


def embeddings_forward(x, conv_w, conv_b, cls_token, pos_emb, patch_size, *,
                       target_rows=1024, out_dtype=jnp.float32):
    """x: (B, C, H, W) NCHW; conv_w: (D, C, ph, pw) (PyTorch layouts)."""
    B, C, H, W = x.shape
    D = conv_w.shape[0]
    ph, pw = patch_size
    Hp, Wp = H // ph, W // pw
    N = Hp * Wp
    K = C * ph * pw
    S = N + 1                                   # cls token + patches

    Kp = _round_up(K, 128)                      # lane-dense contraction dim
    Dp = _round_up(D, 128)                      # lane-dense output dim
    S_pad = _round_up(S, 8)                     # sublane-aligned sequence dim
    BG = _pick_batch_group(B, S_pad, target_rows)

    # --- glue: extract non-overlapping patches, cast to bf16, then ONE pad that
    #     prepends the zero "cls patch" row, pads the sequence tail, and pads K. ---
    patches = x.reshape(B, C, Hp, ph, Wp, pw)
    patches = patches.transpose(0, 2, 4, 1, 3, 5)            # (B, Hp, Wp, C, ph, pw)
    patches = patches.reshape(B, N, K).astype(jnp.bfloat16)
    patches = jnp.pad(patches, ((0, 0), (1, S_pad - 1 - N), (0, Kp - K)))  # (B, S_pad, Kp)

    # Conv weight (D, C, ph, pw) -> (K, D); same (C, ph, pw) contraction order as
    # the patch flattening above.  bf16 inputs for the MXU.
    w_mat = conv_w.reshape(D, K).T.astype(jnp.bfloat16)
    w_mat = jnp.pad(w_mat, ((0, Kp - K), (0, Dp - D)))        # (Kp, Dp)

    # Single per-sequence add table (f32, tiny, VMEM-resident, loaded once):
    #   row 0:      cls_token + pos[0]    (matmul contributes 0 there)
    #   rows 1..N:  pos[1:]   + conv_b
    #   padding:    0
    pos = pos_emb.reshape(S, D).astype(jnp.float32)
    add_tbl = jnp.concatenate(
        [cls_token.reshape(1, D).astype(jnp.float32) + pos[:1],
         pos[1:] + conv_b.reshape(1, D).astype(jnp.float32)], axis=0)   # (S, D)
    add_tbl = jnp.pad(add_tbl, ((0, S_pad - S), (0, Dp - D)))           # (S_pad, Dp)

    out = pl.pallas_call(
        embeddings_kernel,
        out_shape=jax.ShapeDtypeStruct((B, S_pad, Dp), out_dtype),
        grid_spec=pltpu.PrefetchScalarGridSpec(
            num_scalar_prefetch=0,
            grid=(B // BG,),
            in_specs=[
                pl.BlockSpec((BG, S_pad, Kp), lambda i: (i, 0, 0)),
                # Grid-invariant operands: constant index_map => Pallas keeps
                # them resident in VMEM, no re-DMA between steps.
                pl.BlockSpec((Kp, Dp), lambda i: (0, 0)),
                pl.BlockSpec((S_pad, Dp), lambda i: (0, 0)),
            ],
            out_specs=pl.BlockSpec((BG, S_pad, Dp), lambda i: (i, 0, 0)),
        ),
        compiler_params=pltpu.CompilerParams(
            dimension_semantics=("parallel",)),   # batch-group tiles shard across TCs
    )(patches, w_mat, add_tbl)

    # Strip sequence / lane padding, restore (B, N+1, D).
    return out[:, :S, :D]


def reference_forward(x, conv_w, conv_b, cls_token, pos_emb, patch_size):
    """Pure-JAX f32 reference using lax conv (mirrors the PyTorch forward)."""
    B = x.shape[0]
    D = conv_w.shape[0]
    y = jax.lax.conv_general_dilated(
        x, conv_w, window_strides=patch_size, padding="VALID",
        dimension_numbers=("NCHW", "OIHW", "NCHW"))
    y = y + conv_b.reshape(1, D, 1, 1)
    y = y.reshape(B, D, -1).transpose(0, 2, 1)                # (B, N, D)
    cls = jnp.broadcast_to(cls_token.reshape(1, 1, D), (B, 1, D))
    y = jnp.concatenate([cls, y], axis=1)
    return y + pos_emb                                        # dropout == identity (eval)


if __name__ == "__main__":
    # Small config consistent with the module: img 16x16, patch 4x4, hidden 32.
    B, C, H, W = 2, 3, 16, 16
    patch_size = (4, 4)
    hidden = 32
    n_patches = (H // patch_size[0]) * (W // patch_size[1])

    key = jax.random.PRNGKey(0)
    kx, kw, kb, kc, kp = jax.random.split(key, 5)
    x = jax.random.normal(kx, (B, C, H, W), dtype=jnp.float32)
    conv_w = jax.random.normal(kw, (hidden, C, *patch_size), dtype=jnp.float32) * 0.02
    conv_b = jax.random.normal(kb, (hidden,), dtype=jnp.float32) * 0.02
    # (PyTorch inits these to zeros; random-but-deterministic here to exercise the adds.)
    cls_token = jax.random.normal(kc, (1, 1, hidden), dtype=jnp.float32) * 0.02
    pos_emb = jax.random.normal(kp, (1, n_patches + 1, hidden), dtype=jnp.float32) * 0.02

    out = embeddings_forward(x, conv_w, conv_b, cls_token, pos_emb, patch_size)
    out = jax.block_until_ready(out)

    ref = reference_forward(x, conv_w, conv_b, cls_token, pos_emb, patch_size)
    assert out.shape == (B, n_patches + 1, hidden), out.shape
    # bf16 matmul inputs (f32 accumulation) => relaxed tolerance vs f32 reference.
    max_err = float(jnp.max(jnp.abs(out - ref)))
    assert jnp.allclose(out, ref, atol=1e-2, rtol=1e-2), max_err
    print("KERNEL_OK")
</pallas_src>

<mosaic_0001>
module attributes {stable_mosaic.version = 11 : i64} {
  func.func @embeddings_kernel(%arg0: i32, %arg1: memref<2x24x128xbf16, #tpu.memory_space<vmem>>, %arg2: memref<128x128xbf16, #tpu.memory_space<vmem>>, %arg3: memref<24x128xf32, #tpu.memory_space<vmem>>, %arg4: memref<2x24x128xf32, #tpu.memory_space<vmem>>) attributes {dimension_semantics = [#tpu.dimension_semantics<parallel>], iteration_bounds = array<i64: 1>, scalar_prefetch = 0 : i64, scratch_operands = 0 : i64, tpu.core_type = #tpu.core_type<tc>, window_params = [{transform_indices = @transform_0, window_bounds = array<i64: 2, 24, 128>}, {pipeline_mode = #tpu.pipeline_mode<synchronous>, transform_indices = @transform_1, window_bounds = array<i64: 128, 128>}, {pipeline_mode = #tpu.pipeline_mode<synchronous>, transform_indices = @transform_2, window_bounds = array<i64: 24, 128>}, {transform_indices = @transform_3, window_bounds = array<i64: 2, 24, 128>}]} {
    %c0 = arith.constant 0 : index
    %c0_0 = arith.constant 0 : index
    %c0_1 = arith.constant 0 : index
    %0 = vector.load %arg1[%c0, %c0_0, %c0_1] : memref<2x24x128xbf16, #tpu.memory_space<vmem>>, vector<2x24x128xbf16>
    %1 = vector.shape_cast %0 : vector<2x24x128xbf16> to vector<48x128xbf16>
    %c0_2 = arith.constant 0 : index
    %c0_3 = arith.constant 0 : index
    %2 = vector.load %arg2[%c0_2, %c0_3] : memref<128x128xbf16, #tpu.memory_space<vmem>>, vector<128x128xbf16>
    %cst = arith.constant dense<0.000000e+00> : vector<48x128xf32>
    %3 = tpu.matmul %1, %2, %cst {dimension_numbers = #tpu.dot_dimension_numbers<[1], [0], [0], [1], [0, 0, 1, 1], [], []>} : vector<48x128xbf16>, vector<128x128xbf16>, vector<48x128xf32> -> vector<48x128xf32>
    %4 = vector.shape_cast %3 : vector<48x128xf32> to vector<2x24x128xf32>
    %c0_4 = arith.constant 0 : index
    %c0_5 = arith.constant 0 : index
    %5 = vector.load %arg3[%c0_4, %c0_5] : memref<24x128xf32, #tpu.memory_space<vmem>>, vector<24x128xf32>
    %6 = vector.shape_cast %5 : vector<24x128xf32> to vector<1x24x128xf32>
    %7 = vector.broadcast %6 : vector<1x24x128xf32> to vector<2x24x128xf32>
    %8 = arith.addf %4, %7 : vector<2x24x128xf32>
    %c0_6 = arith.constant 0 : index
    %c0_7 = arith.constant 0 : index
    %c0_8 = arith.constant 0 : index
    %9 = vector.load %arg4[%c0_6, %c0_7, %c0_8] : memref<2x24x128xf32, #tpu.memory_space<vmem>>, vector<2x24x128xf32>
    tpu.vector_store %arg4[%c0_6, %c0_7, %c0_8], %8 {strides = array<i32>} : memref<2x24x128xf32, #tpu.memory_space<vmem>>, vector<2x24x128xf32>,
    return
  }
  func.func @transform_0(%arg0: i32) -> (i32, i32, i32) {
    %c0_i32 = arith.constant 0 : i32
    %c0_i32_0 = arith.constant 0 : i32
    %c0_i32_1 = arith.constant 0 : i32
    return %arg0, %c0_i32, %c0_i32_0 : i32, i32, i32
  }
  func.func @transform_1(%arg0: i32) -> (i32, i32) {
    %c0_i32 = arith.constant 0 : i32
    %c0_i32_0 = arith.constant 0 : i32
    %c0_i32_1 = arith.constant 0 : i32
    return %c0_i32, %c0_i32_0 : i32, i32
  }
  func.func @transform_2(%arg0: i32) -> (i32, i32) {
    %c0_i32 = arith.constant 0 : i32
    %c0_i32_0 = arith.constant 0 : i32
    %c0_i32_1 = arith.constant 0 : i32
    return %c0_i32, %c0_i32_0 : i32, i32
  }
  func.func @transform_3(%arg0: i32) -> (i32, i32, i32) {
    %c0_i32 = arith.constant 0 : i32
    %c0_i32_0 = arith.constant 0 : i32
    %c0_i32_1 = arith.constant 0 : i32
    return %arg0, %c0_i32, %c0_i32_0 : i32, i32, i32
  }
}

</mosaic_0001>

<bundles_post_ra>
// kernel: tpu_custom_call.1
= control target key start
LH: loop header
LB: loop body
LE: loop exit
PB: predicated region body
PF: predicated region fallthrough
CT: control target
= control target key end

     0   :  { %8 = vsyncpa [#allocation3], 0  ;;  %s459_s0 = inlined_call_operand.hbm [shape: bf16[2,24,128], index: 0, kind: input, shape index: {}]   ;;  %s460_s1 = inlined_call_operand.hbm [shape: bf16[128,128], index: 1, kind: input, shape index: {}]   ;;  %s461_s2 = inlined_call_operand.hbm [shape: f32[24,128], index: 2, kind: input, shape index: {}]   ;;  %s462_s3 = inlined_call_operand.hbm [shape: f32[2,24,128], index: 3, kind: output, shape index: {}]  }
   0x1   :  { %9 = vsyncpa [#allocation6], 0 }
   0x2   :  { %10 = vsyncpa [#allocation4], 0  ;;  %s408_s12 = smov [#allocation5]   ;;  %s409_s14 = smov [#allocation2]  }
   0x3   :  { %s28_s13 = sshll.u32 %s408_s12, 4  ;;  %s16_s15 = sshll.u32 %s409_s14, 4  ;;  %s29_s13 = int_to_ptr.vmem [resolvable:$true] %s28_s13  ;;  %s17_s15 = int_to_ptr.vmem [resolvable:$true] %s16_s15 }
   0x4   :  { %s330_s16 = scalar_lea.vmem %s29_s13, 1024  ;;  %p335_p1 = scmp.lt.s32.totalorder %s29_s13, %s29_s13 }
   0x5   :  { %p331_p0 = scmp.ne.s32.totalorder %s29_s13, %s330_s16  ;;  %p336_p2 = scmp.lt.s32.totalorder %s330_s16, %s330_s16 }
   0x7   :  { %p337_p3 = por %p336_p2, %p335_p1 }
   0x9   :  { %p338_p4 = pnand %p337_p3, %p331_p0 }
   0xb   :  { %341 = shalt.err (!%p338_p4)
}
   0xc   :  { %s410_s17 = smov 64   ;;  %s411_s18 = smov 4  }
   0xd   :  { %34 = dma.hbm_to_vmem [thread:$0]  %s460_s1, 1024, %s29_s13, [#allocation6], %s410_s17, %s410_s17, %s411_s18  }
   0xe   :  { %s350_s21 = scalar_lea.vmem %s17_s15, 384  ;;  %p355_p6 = scmp.lt.s32.totalorder %s17_s15, %s17_s15 }
   0xf   :  { %p351_p5 = scmp.ne.s32.totalorder %s17_s15, %s350_s21  ;;  %p356_p7 = scmp.lt.s32.totalorder %s350_s21, %s350_s21 }
  0x11   :  { %p357_p8 = por %p356_p7, %p355_p6 }
  0x13   :  { %p358_p9 = pnand %p357_p8, %p351_p5 }
  0x15   :  { %361 = shalt.err (!%p358_p9)
}
  0x16   :  { %22 = dma.hbm_to_vmem [thread:$0]  %s459_s0, 384, %s17_s15, [#allocation3], %s410_s17, %s410_s17, %s411_s18  }
  0x17   :  { %s412_s24 = smov [#allocation7]  }
  0x18   :  { %s40_s25 = sshll.u32 %s412_s24, 4  ;;  %s41_s25 = int_to_ptr.vmem [resolvable:$true] %s40_s25 }
  0x19   :  { %s370_s26 = scalar_lea.vmem %s41_s25, 384  ;;  %p375_p11 = scmp.lt.s32.totalorder %s41_s25, %s41_s25 }
  0x1a   :  { %p371_p10 = scmp.ne.s32.totalorder %s41_s25, %s370_s26  ;;  %p376_p12 = scmp.lt.s32.totalorder %s370_s26, %s370_s26 }
  0x1c   :  { %p377_p13 = por %p376_p12, %p375_p11 }
  0x1e   :  { %p378_p0 = pnand %p377_p13, %p371_p10 }
  0x20   :  { %381 = shalt.err (!%p378_p0)
}
  0x21   :  { %s413_s1 = smov 128   ;;  %s414_s27 = smov 8  }
  0x22   :  { %46 = dma.hbm_to_vmem [thread:$0]  %s461_s2, 384, %s41_s25, [#allocation6], %s413_s1, %s413_s1, %s414_s27  }
  0x23   :  { %402 = dma.done.wait [#allocation3], 384  }
  0x24   :  { %403 = vsyncadd [#allocation3], 4294966912 }
  0x25   :  { %404 = dma.done.wait [#allocation6], 1408  }
  0x26   :  { %405 = vsyncadd [#allocation6], 4294965888  ;;  %v415_v0 = vmov 0.0   ;;  %vm416_vm0 = vmmov 0   ;;  %v311_v1 = vld [vmem:[#allocation5 + $0x38] sm:$0xff]   ;;  %v312_v2 = vld [vmem:[#allocation5 + $0x30] sm:$0xff]  }
  0x27   :  { %285 = vmatprep.subr.bf16.mxu1 %v415_v0  ;;  %257 = vmatprep.subr.bf16.mxu0 %v415_v0  ;;  %v313_v3 = vld [vmem:[#allocation5 + $0x28] sm:$0xff]   ;;  %v314_v4 = vld [vmem:[#allocation5 + $0x20] sm:$0xff]   ;;  %v315_v5 = vld [vmem:[#allocation5 + $0x18] sm:$0xff]   ;;  %s417_s0 = smov [#allocation8]  }
  0x28   :  { %277 = vmatprep.mubr.msk.bf16.mxu1 %vm416_vm0, %v415_v0  ;;  %273 = vmatprep.mubr.msk.bf16.mxu0 %vm416_vm0, %v415_v0  ;;  %v316_v6 = vld [vmem:[#allocation5 + $0x10] sm:$0xff]   ;;  %v317_v7 = vld [vmem:[#allocation5 + $0x8] sm:$0xff]   ;;  %v318_v8 = vld [vmem:[#allocation5] sm:$0xff]   ;;  %s222_s2 = sshll.u32 %s417_s0, 4  ;;  %s223_s2 = int_to_ptr.vmem [resolvable:$true] %s222_s2 }
  0x29   :  { %293 = vmatpush3.bf16.msra.mxu1 %v311_v1  ;;  %258 = vmatpush3.bf16.msra.mxu0 %v311_v1  ;;  %v319_v9 = vld [vmem:[#allocation2 + $0x8] sm:$0xff]   ;;  %v320_v10 = vld [vmem:[#allocation2] sm:$0xff]   ;;  %v321_v11 = vld [vmem:[#allocation2 + $0x10] sm:$0xff]   ;;  %s382_s30 = scalar_lea.vmem %s223_s2, 768  ;;  %p387_p2 = scmp.lt.s32.totalorder %s223_s2, %s223_s2 }
  0x2a   :  { %286 = vmatprep.subr.bf16.mxu1 %v415_v0  ;;  %259 = vmatprep.subr.bf16.mxu0 %v415_v0  ;;  %v204_v12 = vld [vmem:[#allocation7 + $0x10] sm:$0xff]  ;;  %v202_v15 = vld [vmem:[#allocation7] sm:$0xff]  ;;  %v203_v20 = vld [vmem:[#allocation7 + $0x8] sm:$0xff]  ;;  %p383_p1 = scmp.ne.s32.totalorder %s223_s2, %s382_s30  ;;  %p388_p3 = scmp.lt.s32.totalorder %s382_s30, %s382_s30 }
  0x2c   :  { %p389_p4 = por %p388_p3, %p387_p2 }
  0x2d   :  { %294 = vmatpush3.bf16.msra.mxu1 %v312_v2  ;;  %260 = vmatpush3.bf16.msra.mxu0 %v312_v2 }
  0x2e   :  { %287 = vmatprep.subr.bf16.mxu1 %v415_v0  ;;  %261 = vmatprep.subr.bf16.mxu0 %v415_v0  ;;  %p390_p5 = pnand %p389_p4, %p383_p1 }
  0x31   :  { %295 = vmatpush3.bf16.msra.mxu1 %v313_v3  ;;  %262 = vmatpush3.bf16.msra.mxu0 %v313_v3 }
  0x32   :  { %288 = vmatprep.subr.bf16.mxu1 %v415_v0  ;;  %263 = vmatprep.subr.bf16.mxu0 %v415_v0 }
  0x35   :  { %296 = vmatpush3.bf16.msra.mxu1 %v314_v4  ;;  %264 = vmatpush3.bf16.msra.mxu0 %v314_v4 }
  0x36   :  { %289 = vmatprep.subr.bf16.mxu1 %v415_v0  ;;  %265 = vmatprep.subr.bf16.mxu0 %v415_v0 }
  0x39   :  { %297 = vmatpush3.bf16.msra.mxu1 %v315_v5  ;;  %266 = vmatpush3.bf16.msra.mxu0 %v315_v5 }
  0x3a   :  { %290 = vmatprep.subr.bf16.mxu1 %v415_v0  ;;  %267 = vmatprep.subr.bf16.mxu0 %v415_v0 }
  0x3d   :  { %298 = vmatpush3.bf16.msra.mxu1 %v316_v6  ;;  %268 = vmatpush3.bf16.msra.mxu0 %v316_v6 }
  0x3e   :  { %291 = vmatprep.subr.bf16.mxu1 %v415_v0  ;;  %269 = vmatprep.subr.bf16.mxu0 %v415_v0 }
  0x41   :  { %299 = vmatpush3.bf16.msra.mxu1 %v317_v7  ;;  %270 = vmatpush3.bf16.msra.mxu0 %v317_v7 }
  0x42   :  { %292 = vmatprep.subr.bf16.mxu1 %v415_v0  ;;  %271 = vmatprep.subr.bf16.mxu0 %v415_v0 }
  0x45   :  { %300 = vmatpush3.bf16.msra.mxu1 %v318_v8  ;;  %272 = vmatpush3.bf16.msra.mxu0 %v318_v8 }
  0x48   :  { %278 = vmatmul.mubr.bf16.vlgmr.msra.gmra.mxu1 %v319_v9  ;;  %274 = vmatmul.mubr.bf16.vlgmr.msra.gmra.mxu0 %v320_v10 }
  0x49   :  { %281 = vmatprep.mubr.msk.bf16.mxu1 %vm416_vm0, %v415_v0 }
  0x50   :  { %282 = vmatmul.mubr.bf16.gmra.mxu1 %v321_v11 }
 0x108   :  { %v187_v13 = vpop.f32.mrf.mxu1  ;;  %v179_v14 = vpop.f32.mrf.mxu0 }
 0x109   :  { %v207_v16 = vadd.f32 %v204_v12, %v187_v13  ;;  %v205_v17 = vadd.f32 %v202_v15, %v179_v14 }
 0x10a   :  { %v279_v18 = vpop.f32.mrf.mxu1  ;;  %v275_v19 = vpop.f32.mrf.mxu0 }
 0x10b   :  { %213 = vst [vmem:[#allocation8 + $0x10] sm:$0xff] %v207_v16  ;;  %211 = vst [vmem:[#allocation8] sm:$0xff] %v205_v17 }
 0x10c   :  { %v190_v21 = vpop.f32.mrf.mxu1  ;;  %v182_v22 = vpop.f32.mrf.mxu0 }
 0x10d   :  { %v208_v23 = vadd.f32 %v202_v15, %v190_v21  ;;  %v206_v24 = vadd.f32 %v203_v20, %v182_v22 }
 0x10e   :  { %v280_v25 = vpop.f32.mrf.mxu1  ;;  %v276_v26 = vpop.f32.mrf.mxu0 }
 0x10f   :  { %214 = vst [vmem:[#allocation8 + $0x18] sm:$0xff] %v208_v23  ;;  %212 = vst [vmem:[#allocation8 + $0x8] sm:$0xff] %v206_v24 }
 0x110   :  { %v195_v27 = vpop.f32.mrf.mxu1 }
 0x111   :  { %v209_v28 = vadd.f32 %v203_v20, %v195_v27 }
 0x112   :  { %v283_v29 = vpop.f32.mrf.mxu1 }
 0x113   :  { %215 = vst [vmem:[#allocation8 + $0x20] sm:$0xff] %v209_v28 }
 0x114   :  { %v198_v30 = vpop.f32.mrf.mxu1 }
 0x115   :  { %v210_v31 = vadd.f32 %v204_v12, %v198_v30 }
 0x116   :  { %v284_v32 = vpop.f32.mrf.mxu1 }
 0x117   :  { %216 = vst [vmem:[#allocation8 + $0x28] sm:$0xff] %v210_v31 }
 0x118   :  { %393 = shalt.err (!%p390_p5)
}
 0x119   :  { %228 = dma.vmem_to_hbm [thread:$0]  %s223_s2, 768, %s462_s3, [#allocation4], %s413_s1, %s413_s1, %s414_s27  }
 0x11a   :  { %406 = dma.done.wait [#allocation4], 768  }
 0x11b   :  { %407 = vsyncadd [#allocation4], 4294966528 }
 0x11c   :  { %232 = vsyncpa [#allocation3], 1 }
 0x11d   :  { %233 = vsyncpa [#allocation6], 1 }
 0x11e   :  { %234 = vsyncpa [#allocation4], 1 }

</bundles_post_ra>
